<compile_context>
chip_gen: v7x
topology: tpu7x:2x2x1
jax: 0.10.0
libtpu: 0.0.40
codegen_flags: <defaults>
</compile_context>

<pallas_src>
import math

import jax
import jax.numpy as jnp
from jax.experimental import pallas as pl
from jax.experimental.pallas import tpu as pltpu

_NEG_SLOPE = 0.01  # PyTorch nn.LeakyReLU default

# Tile caps (f32): 512-wide tiles keep the pipelined footprint ~6 MiB, safe on
# every generation including v7x (64 MiB physical VMEM).
_TILE_M = 512
_TILE_N = 512
_TILE_K = 512


def _round_up(x, m):
    return ((x + m - 1) // m) * m


def _pick_tile(size, preferred, align):
    """Tile <= preferred (aligned to `align`) and the padded size it divides."""
    size_pad = _round_up(size, align)
    tile = _round_up(min(preferred, size_pad), align)
    size_pad = _round_up(size_pad, tile)
    return tile, size_pad


def _vmem_limit_bytes():
    """Half of physical VMEM: 64 MiB on v5e/v6e, 32 MiB on v7x."""
    try:
        cap = int(pltpu.get_tpu_info().vmem_capacity_bytes)
    except Exception:
        cap = 64 * 1024 * 1024
    return cap // 2


def _linear_leakyrelu_kernel_f32(x_ref, w_ref, b_ref, o_ref):
    # x_ref: (tm, tk) activations; w_ref: (tk, tn) = W^T tile (pre-transposed
    # in the wrapper, so the contraction is a plain MXU matmul with no XLU
    # transpose); b_ref: (1, tn) f32 bias; o_ref: (tm, tn) f32 output tile,
    # VMEM-resident across the K grid axis -> doubles as the accumulator.
    k = pl.program_id(2)

    @pl.when(k == 0)
    def _init():
        o_ref[...] = jnp.zeros_like(o_ref)

    o_ref[...] += jnp.dot(x_ref[...], w_ref[...],
                          preferred_element_type=jnp.float32)

    @pl.when(k == pl.num_programs(2) - 1)
    def _epilogue():
        acc = o_ref[...] + b_ref[...]
        o_ref[...] = jnp.where(acc > 0, acc, jnp.float32(_NEG_SLOPE) * acc)


def _linear_leakyrelu_kernel_acc(x_ref, w_ref, b_ref, o_ref, acc_ref):
    # Variant with an f32 scratch accumulator, used only when the output dtype
    # is narrower than f32.
    k = pl.program_id(2)

    @pl.when(k == 0)
    def _init():
        acc_ref[...] = jnp.zeros_like(acc_ref)

    acc_ref[...] += jnp.dot(x_ref[...], w_ref[...],
                            preferred_element_type=jnp.float32)

    @pl.when(k == pl.num_programs(2) - 1)
    def _epilogue():
        acc = acc_ref[...] + b_ref[...]
        out = jnp.where(acc > 0, acc, jnp.float32(_NEG_SLOPE) * acc)
        o_ref[...] = out.astype(o_ref.dtype)


def prepare_linear_params(w, b, compute_dtype=None):
    """One-time weight prep (run OFF the hot path).

    Transposes W from PyTorch (out, in) to (in, out) and pads the lane dims to
    multiples of 128 so the per-call wrapper never copies W.  Optionally casts
    W to a narrower MXU compute dtype (e.g. jnp.bfloat16).
    """
    dim_out, dim_in = w.shape
    _, n_pad = _pick_tile(dim_out, _TILE_N, 128)
    _, k_pad = _pick_tile(dim_in, _TILE_K, 128)

    wt = w.T  # (in, out)
    if (k_pad, n_pad) != (dim_in, dim_out):
        wt = jnp.pad(wt, ((0, k_pad - dim_in), (0, n_pad - dim_out)))
    if compute_dtype is not None:
        wt = wt.astype(compute_dtype)

    b2d = b.reshape(1, dim_out).astype(jnp.float32)
    if n_pad != dim_out:
        b2d = jnp.pad(b2d, ((0, 0), (0, n_pad - dim_out)))
    return wt, b2d, dim_out, dim_in


def linear_layer(x, wt_pad, b_pad, dim_out, dim_in, out_dtype=None):
    """y = LeakyReLU(x @ W^T + b); x: (..., dim_in), wt_pad: padded (in, out)."""
    out_dtype = out_dtype if out_dtype is not None else x.dtype
    lead_shape = x.shape[:-1]
    m = math.prod(lead_shape) if lead_shape else 1

    compute_dtype = wt_pad.dtype
    # Sublane alignment of the M axis: 8 for f32, 16 for packed bf16 tiles.
    align_m = 8 if jnp.dtype(compute_dtype).itemsize >= 4 else 16

    tm, m_pad = _pick_tile(m, _TILE_M, align_m)
    tn, n_pad = _pick_tile(dim_out, _TILE_N, 128)
    tk, k_pad = _pick_tile(dim_in, _TILE_K, 128)
    assert wt_pad.shape == (k_pad, n_pad)
    assert b_pad.shape == (1, n_pad)

    # v7x has 2 TensorCores: guarantee >= 2 blocks along the "parallel" (i, j)
    # axes so both cores get work (negligible cost on single-TC v5e/v6e).
    if (m_pad // tm) * (n_pad // tn) == 1 and tm >= 2 * align_m:
        tm //= 2

    x2d = x.reshape(m, dim_in)
    if x2d.dtype != compute_dtype:
        x2d = x2d.astype(compute_dtype)
    if (m_pad, k_pad) != (m, dim_in):
        x2d = jnp.pad(x2d, ((0, m_pad - m), (0, k_pad - dim_in)))

    grid = (m_pad // tm, n_pad // tn, k_pad // tk)

    # Advisory cost estimate counting the actual re-streamed HBM traffic.
    in_bytes = jnp.dtype(compute_dtype).itemsize
    out_bytes = jnp.dtype(out_dtype).itemsize
    cost = pl.CostEstimate(
        flops=2 * m_pad * k_pad * n_pad,
        transcendentals=0,
        bytes_accessed=(grid[1] * m_pad * k_pad * in_bytes      # x re-read per j
                        + grid[0] * k_pad * n_pad * in_bytes    # W re-read per i
                        + n_pad * 4                             # bias
                        + m_pad * n_pad * out_bytes),           # output
    )

    f32_out = jnp.dtype(out_dtype) == jnp.dtype(jnp.float32)
    kernel = _linear_leakyrelu_kernel_f32 if f32_out else _linear_leakyrelu_kernel_acc
    scratch = [] if f32_out else [pltpu.VMEM((tm, tn), jnp.float32)]

    out2d = pl.pallas_call(
        kernel,
        out_shape=jax.ShapeDtypeStruct((m_pad, n_pad), out_dtype),
        grid_spec=pltpu.PrefetchScalarGridSpec(
            num_scalar_prefetch=0,
            grid=grid,
            in_specs=[
                pl.BlockSpec((tm, tk), lambda i, j, k: (i, k)),   # x
                pl.BlockSpec((tk, tn), lambda i, j, k: (k, j)),   # W^T (in, out)
                pl.BlockSpec((1, tn), lambda i, j, k: (0, j)),    # bias
            ],
            out_specs=pl.BlockSpec((tm, tn), lambda i, j, k: (i, j)),
            scratch_shapes=scratch,
        ),
        compiler_params=pltpu.CompilerParams(
            dimension_semantics=("parallel", "parallel", "arbitrary"),
            vmem_limit_bytes=_vmem_limit_bytes(),
        ),
        cost_estimate=cost,
    )(x2d, wt_pad, b_pad)

    out2d = out2d[:m, :dim_out]
    return out2d.reshape(*lead_shape, dim_out)


if __name__ == "__main__":
    key = jax.random.PRNGKey(0)
    k_x, k_w, k_b = jax.random.split(key, 3)

    batch, seq, dim = 2, 8, 32

    # Deterministic init mirroring nn.Linear's uniform(-1/sqrt(dim), 1/sqrt(dim)).
    bound = 1.0 / math.sqrt(dim)
    w = jax.random.uniform(k_w, (dim, dim), jnp.float32, -bound, bound)  # (out, in)
    b = jax.random.uniform(k_b, (dim,), jnp.float32, -bound, bound)
    x = jax.random.normal(k_x, (batch, seq, dim), jnp.float32)

    # One-time weight prep (transpose + pad) off the hot path.
    # For bf16 MXU compute: prepare_linear_params(w, b, compute_dtype=jnp.bfloat16)
    wt_pad, b_pad, dim_out, dim_in = prepare_linear_params(w, b)

    y = linear_layer(x, wt_pad, b_pad, dim_out, dim_in)
    jax.block_until_ready(y)

    # Reference check in plain JAX.
    ref = x @ w.T + b
    ref = jnp.where(ref > 0, ref, _NEG_SLOPE * ref)
    assert y.shape == x.shape
    assert jnp.allclose(y, ref, atol=1e-5, rtol=1e-5)

    print("KERNEL_OK")
</pallas_src>

<mosaic_0001>
module attributes {stable_mosaic.version = 11 : i64} {
  func.func @_linear_leakyrelu_kernel_f32(%arg0: i32, %arg1: i32, %arg2: i32, %arg3: memref<8x128xf32, #tpu.memory_space<vmem>>, %arg4: memref<128x128xf32, #tpu.memory_space<vmem>>, %arg5: memref<1x128xf32, #tpu.memory_space<vmem>>, %arg6: memref<8x128xf32, #tpu.memory_space<vmem>>) attributes {dimension_semantics = [#tpu.dimension_semantics<parallel>, #tpu.dimension_semantics<parallel>, #tpu.dimension_semantics<arbitrary>], iteration_bounds = array<i64: 2, 1, 1>, scalar_prefetch = 0 : i64, scratch_operands = 0 : i64, tpu.core_type = #tpu.core_type<tc>, window_params = [{transform_indices = @transform_0, window_bounds = array<i64: 8, 128>}, {transform_indices = @transform_1, window_bounds = array<i64: 128, 128>}, {transform_indices = @transform_2, window_bounds = array<i64: 1, 128>}, {transform_indices = @transform_3, window_bounds = array<i64: 8, 128>}]} {
    %c0_i32 = arith.constant 0 : i32
    %0 = arith.cmpi eq, %arg2, %c0_i32 : i32
    %1 = arith.extui %0 : i1 to i32
    %c0_i32_0 = arith.constant 0 : i32
    %2 = arith.cmpi ne, %1, %c0_i32_0 : i32
    scf.if %2 {
      %cst_10 = arith.constant 0.000000e+00 : f32
      %12 = vector.broadcast %cst_10 : f32 to vector<8x128xf32>
      %c0_11 = arith.constant 0 : index
      %c0_12 = arith.constant 0 : index
      %13 = vector.load %arg6[%c0_11, %c0_12] : memref<8x128xf32, #tpu.memory_space<vmem>>, vector<8x128xf32>
      tpu.vector_store %arg6[%c0_11, %c0_12], %12 {strides = array<i32>} : memref<8x128xf32, #tpu.memory_space<vmem>>, vector<8x128xf32>,
    } else {
    }
    %c0 = arith.constant 0 : index
    %c0_1 = arith.constant 0 : index
    %3 = vector.load %arg6[%c0, %c0_1] : memref<8x128xf32, #tpu.memory_space<vmem>>, vector<8x128xf32>
    %c0_2 = arith.constant 0 : index
    %c0_3 = arith.constant 0 : index
    %4 = vector.load %arg3[%c0_2, %c0_3] : memref<8x128xf32, #tpu.memory_space<vmem>>, vector<8x128xf32>
    %c0_4 = arith.constant 0 : index
    %c0_5 = arith.constant 0 : index
    %5 = vector.load %arg4[%c0_4, %c0_5] : memref<128x128xf32, #tpu.memory_space<vmem>>, vector<128x128xf32>
    %cst = arith.constant dense<0.000000e+00> : vector<8x128xf32>
    %6 = tpu.matmul %4, %5, %cst {dimension_numbers = #tpu.dot_dimension_numbers<[1], [0], [0], [1], [0, 0, 1, 1], [], []>} : vector<8x128xf32>, vector<128x128xf32>, vector<8x128xf32> -> vector<8x128xf32>
    %7 = arith.addf %3, %6 : vector<8x128xf32>
    %c0_6 = arith.constant 0 : index
    %c0_7 = arith.constant 0 : index
    %8 = vector.load %arg6[%c0_6, %c0_7] : memref<8x128xf32, #tpu.memory_space<vmem>>, vector<8x128xf32>
    tpu.vector_store %arg6[%c0_6, %c0_7], %7 {strides = array<i32>} : memref<8x128xf32, #tpu.memory_space<vmem>>, vector<8x128xf32>,
    %c0_i32_8 = arith.constant 0 : i32
    %9 = arith.cmpi eq, %arg2, %c0_i32_8 : i32
    %10 = arith.extui %9 : i1 to i32
    %c0_i32_9 = arith.constant 0 : i32
    %11 = arith.cmpi ne, %10, %c0_i32_9 : i32
    scf.if %11 {
      %c0_10 = arith.constant 0 : index
      %c0_11 = arith.constant 0 : index
      %12 = vector.load %arg6[%c0_10, %c0_11] : memref<8x128xf32, #tpu.memory_space<vmem>>, vector<8x128xf32>
      %c0_12 = arith.constant 0 : index
      %c0_13 = arith.constant 0 : index
      %13 = vector.load %arg5[%c0_12, %c0_13] : memref<1x128xf32, #tpu.memory_space<vmem>>, vector<1x128xf32>
      %14 = vector.broadcast %13 : vector<1x128xf32> to vector<8x128xf32>
      %15 = arith.addf %12, %14 : vector<8x128xf32>
      %cst_14 = arith.constant 0.000000e+00 : f32
      %16 = vector.broadcast %cst_14 : f32 to vector<8x128xf32>
      %17 = arith.cmpf ogt, %15, %16 : vector<8x128xf32>
      %cst_15 = arith.constant 0.00999999977 : f32
      %18 = vector.broadcast %cst_15 : f32 to vector<8x128xf32>
      %19 = arith.mulf %18, %15 : vector<8x128xf32>
      %20 = arith.select %17, %15, %19 : vector<8x128xi1>, vector<8x128xf32>
      %c0_16 = arith.constant 0 : index
      %c0_17 = arith.constant 0 : index
      %21 = vector.load %arg6[%c0_16, %c0_17] : memref<8x128xf32, #tpu.memory_space<vmem>>, vector<8x128xf32>
      tpu.vector_store %arg6[%c0_16, %c0_17], %20 {strides = array<i32>} : memref<8x128xf32, #tpu.memory_space<vmem>>, vector<8x128xf32>,
    } else {
    }
    return
  }
  func.func @transform_0(%arg0: i32, %arg1: i32, %arg2: i32) -> (i32, i32) {
    %c0_i32 = arith.constant 0 : i32
    return %arg0, %arg2 : i32, i32
  }
  func.func @transform_1(%arg0: i32, %arg1: i32, %arg2: i32) -> (i32, i32) {
    %c0_i32 = arith.constant 0 : i32
    return %arg2, %arg1 : i32, i32
  }
  func.func @transform_2(%arg0: i32, %arg1: i32, %arg2: i32) -> (i32, i32) {
    %c0_i32 = arith.constant 0 : i32
    %c0_i32_0 = arith.constant 0 : i32
    return %c0_i32, %arg1 : i32, i32
  }
  func.func @transform_3(%arg0: i32, %arg1: i32, %arg2: i32) -> (i32, i32) {
    %c0_i32 = arith.constant 0 : i32
    return %arg0, %arg1 : i32, i32
  }
}

</mosaic_0001>

<bundles_post_ra>
// kernel: tpu_custom_call.1
= control target key start
LH: loop header
LB: loop body
LE: loop exit
PB: predicated region body
PF: predicated region fallthrough
CT: control target
= control target key end

     0   :  { %8 = vsyncpa [#allocation3], 0  ;;  %s1055_s0 = inlined_call_operand.hbm [shape: f32[16,128], index: 0, kind: input, shape index: {}]   ;;  %s1056_s1 = inlined_call_operand.hbm [shape: f32[128,128], index: 1, kind: input, shape index: {}]   ;;  %s1057_s2 = inlined_call_operand.vmem [shape: f32[1,128], index: 2, kind: input, shape index: {}]   ;;  %s1058_s3 = inlined_call_operand.hbm [shape: f32[16,128], index: 3, kind: output, shape index: {}]  }
   0x1   :  { %10 = vsyncpa [#allocation3 + $0x1], 0 }
   0x2   :  { %11 = vsyncpa [#allocation6], 0 }
   0x3   :  { %12 = vsyncpa [#allocation4], 0 }
   0x4   :  { %14 = vsyncpa [#allocation4 + $0x1], 0  ;;  %s831_s12 = smov 0   ;;  %s833_s13 = smov 0  }
   0x5   :  { %s835_s14 = smov 0   ;;  %s837_s15 = smov 0  }
   0x6   :  { %s839_s16 = smov 0   ;;  %s841_s17 = smov 0  }
   0x7 LB: > { %s486_s18 = sadd.s32 4294967295, %s801_s17   ;;  %s487_s19 = sadd.s32 4294967294, %s801_s17   ;;  %s801_s17 = sphi %s841_s17, %s20_s17   ;;  %s797_s16 = sphi %s839_s16, %s1082_s16   ;;  %s793_s15 = sphi %s837_s15, %s1081_s15   ;;  %s789_s14 = sphi %s835_s14, %s1080_s14   ;;  %s785_s13 = sphi %s833_s13, %s1079_s13   ;;  %s781_s12 = sphi %s831_s12, %s1078_s12  }
   0x8   : > { %p61_p0 = scmp.ne.s32.totalorder %s785_s13, %s781_s12  ;;  %p865_p1 = scmp.eq.s32.totalorder %s486_s18, 0 }
   0x9   : > { %p869_p2 = scmp.eq.s32.totalorder %s486_s18, 1  ;;  %p147_p3 = scmp.eq.s32.totalorder %s487_s19, 1 }
   0xa   : > { %s1063_s20 = scalar_select %p865_p1, 1, 0 }
   0xb   : > { %s1064_s21 = scalar_select %p869_p2, 1, 0 }
   0xc   : > { %p875_p4 = por %p865_p1, %p61_p0  ;;  %p488_p5 = scmp.ge.s32.totalorder %s801_s17, 1 }
   0xd   : > { %p880_p6 = por %p147_p3, %p61_p0  ;;  %p154_p7 = scmp.lt.s32.totalorder %s801_s17, 3 }
   0xe   : > { %s1065_s22 = scalar_select %p875_p4, 1, 0 }
   0xf   : > { %s1066_s23 = scalar_select %p880_p6, 1, 0 }
  0x10   : > { %p885_p8 = pnand %p488_p5, %p154_p7  ;;  %s803_s25 = smov [#allocation5]  }
  0x11   : > { %s170_s26 = sshll.u32 %s803_s25, 4  ;;  %s39_s28 = sadd.s32 1, %s797_s16  ;;  %s171_s26 = int_to_ptr.vmem [resolvable:$true] %s170_s26 }
  0x12   : > { %s1067_s24 = scalar_select %p885_p8, 1, 0 }
  0x13   : > { %p587_p9 = pneg %p885_p8  ;;  %s657_s4 = scalar_lea.hbm %s1056_s1, 2048 }
  0x14   : > { %p658_p12 = scmp.ne.s32.totalorder %s1056_s1, %s657_s4  ;;  %p664_p5 = scmp.lt.u32.totalorder %s657_s4, %s1056_s1 }
  0x15   : > { %p894_p11 = pnand %p587_p9, %p865_p1 }
  0x17   : > { %p659_p13 = pneg %p894_p11 }
  0x19   : > { %p660_p0 = pnand %p659_p13, %p658_p12 }
  0x1b   : > { %p661_p3 = pneg %p660_p0 }
  0x1d   : > { %p666_p7 = pnand %p664_p5, %p661_p3 }
  0x1f   : > { %669 = shalt.err (!%p666_p7)
}
  0x20   : > { %s670_s9 = scalar_lea.vmem %s171_s26, 2048  ;;  %p678_p1 = scmp.lt.s32.totalorder %s171_s26, %s171_s26 }
  0x21   : > { %p671_p9 = scmp.ne.s32.totalorder %s171_s26, %s670_s9  ;;  %p679_p4 = scmp.lt.s32.totalorder %s670_s9, %s670_s9 }
  0x23   : > { %p673_p10 = pnand %p671_p9, %p659_p13  ;;  %p680_p8 = por %p679_p4, %p678_p1 }
  0x25   : > { %p674_p6 = pneg %p673_p10 }
  0x27   : > { %p681_p2 = pnand %p680_p8, %p674_p6 }
  0x29   : > { %684 = shalt.err (!%p681_p2)
}
  0x2a   : > { %s804_s10 = smov 128   ;;  %s805_s11 = smov 8  }
  0x2b   : > { %590 = dma.hbm_to_vmem [thread:$0]  (!%p894_p11), %s1056_s1, 2048, %s171_s26, [#allocation6], %s804_s10, %s804_s10, %s805_s11  }
  0x2c   : > { %p41_p1 = scmp.ge.s32.totalorder %s39_s28, 2  ;;  %s48_s25 = sadd.s32 1, %s789_s14 }
  0x2d   : > { %p55_p2 = scmp.ne.s32.totalorder %s789_s14, %s785_s13  ;;  %p56_p4 = scmp.eq.s32.totalorder %s801_s17, 0 }
  0x2e   : > { %s1084_s28 = smov (%p41_p1, %s39_s28), 0  ;;  %p1070_p8 = scmp.ne.s32.totalorder %s1064_s21, 0 }
  0x2f   : > { %p921_p6 = por %p56_p4, %p55_p2  ;;  %s43_s27 = ssub.s32 %s797_s16, %s1084_s28 }
  0x30   : > { %p927_p10 = por %p1070_p8, %p55_p2  ;;  %p600_p12 = scmp.lt.s32.totalorder %s801_s17, 2 }
  0x31   : > { %p46_p11 = scmp.eq.s32.totalorder %s43_s27, 0  ;;  %s190_s26 = sand.u32 1, %s789_s14  }
  0x32   : > { %s492_s4 = sshll.u32 %s190_s26, 3  ;;  %s493_s6 = sshll.u32 %s797_s16, 7 }
  0x33   : > { %s936_s5 = scalar_select %p46_p11, %s789_s14, %s48_s25  }
  0x34   : > { %s942_s9 = scalar_lea.hbm %s1055_s0, %s493_s6  ;;  %s194_s21 = scalar_lea.vmem [#allocation2], %s492_s4 }
  0x35   : > { %s202_s10 = sshll.u32 %s194_s21, 4  ;;  %p948_p13 = pnand %p600_p12, %p921_p6  ;;  %s944_s10 = int_to_ptr.vmem [resolvable:$true] %s202_s10 }
  0x36   : > { %s191_s18 = scalar_lea.sflag [#allocation3], %s190_s26  ;;  %s685_s19 = scalar_lea.hbm %s942_s9, 128 }
  0x37   : > { %p686_p0 = scmp.ne.s32.totalorder %s942_s9, %s685_s19  ;;  %p687_p3 = pneg %p948_p13 }
  0x38   : > { %s690_s4 = scalar_lea.hbm %s1055_s0, 256  ;;  %p691_p9 = scmp.lt.u32.totalorder %s942_s9, %s1055_s0 }
  0x39   : > { %p688_p5 = pnand %p687_p3, %p686_p0  ;;  %p692_p1 = scmp.lt.u32.totalorder %s690_s4, %s685_s19 }
  0x3a   : > { %p694_p4 = scmp.lt.u32.totalorder %s685_s19, %s942_s9 }
  0x3b   : > { %p689_p7 = pneg %p688_p5  ;;  %p693_p2 = por %p692_p1, %p691_p9 }
  0x3d   : > { %p695_p6 = por %p694_p4, %p693_p2 }
  0x3f   : > { %p696_p8 = pnand %p695_p6, %p689_p7 }
  0x41   : > { %699 = shalt.err (!%p696_p8)
}
  0x42   : > { %s700_s26 = scalar_lea.vmem %s944_s10, 128  ;;  %s806_s7 = smov [#allocation2]  }
  0x43   : > { %p701_p12 = scmp.ne.s32.totalorder %s944_s10, %s700_s26  ;;  %s705_s8 = sshll.u32 %s806_s7, 4  ;;  %s706_s8 = int_to_ptr.vmem [resolvable:$false] %s705_s8 }
  0x44   : > { %s707_s21 = scalar_lea.vmem %s706_s8, 256  ;;  %p708_p5 = scmp.lt.s32.totalorder %s944_s10, %s706_s8 }
  0x45   : > { %p703_p11 = pnand %p701_p12, %p687_p3  ;;  %p709_p9 = scmp.lt.s32.totalorder %s707_s21, %s700_s26 }
  0x47   : > { %p704_p0 = pneg %p703_p11  ;;  %p710_p1 = por %p709_p9, %p708_p5 }
  0x49   : > { %p711_p2 = pnand %p710_p1, %p704_p0 }
  0x4b   : > { %714 = shalt.err (!%p711_p2)
}
  0x4c   : > { %594 = dma.hbm_to_vmem [thread:$0]  (!%p948_p13), %s942_s9, 128, %s944_s10, %s191_s18  }
  0x4d   : > { %p1073_p7 = scmp.ne.s32.totalorder %s1067_s24, 0 }
  0x4e   : > { %s980_s19 = sand.u32 (!%p1073_p7), 1, %s785_s13   ;;  %p1074_p3 = scmp.ne.s32.totalorder (!%p1073_p7), %s1065_s22, 0 }
  0x4f   : > { %211 = sbr.rel (%p1073_p7) target bundleno = 356 (0x164), region = 32  ;;  %s495_s25 = sshll.u32 (!%p1073_p7), %s980_s19, 3 }
  0x50   : > { %s214_s27 = scalar_lea.sflag (!%p1073_p7), [#allocation3], %s980_s19  ;;  %s986_s4 = scalar_lea.vmem (!%p1073_p7), [#allocation2], %s495_s25 }
  0x56   : > { %768 = dma.done.wait (%p1074_p3), %s214_s27, 128  }
  0x57   : > { %770 = vsyncadd (%p1074_p3), %s214_s27, 4294967168  ;;  %p1075_p13 = scmp.ne.s32.totalorder %s1063_s20, 0 }
  0x59   : > { %772 = dma.done.wait (%p1075_p13), [#allocation6], 2048  }
  0x5a   : > { %774 = vsyncadd (%p1075_p13), [#allocation6], 4294965248  ;;  %v807_v0 = vmov 0.0|0.0   ;;  %vm808_vm0 = vmmov 0   ;;  %v809_v1 = vmov 0.0   ;;  %v258_v2 = vld [vmem:[#allocation5] sm:$0xff] }
  0x5b   : > { %555 = vmatprep.subr.bf16.mxu0 %v807_v0  ;;  %552 = vmatprep.mubr.msk.f32.mxu0 %vm808_vm0, %v809_v1  ;;  %v259_v3 = vld [vmem:[#allocation5 + $0x8] sm:$0xff]  ;;  %v260_v4 = vld [vmem:[#allocation5 + $0x10] sm:$0xff]  ;;  %v261_v6 = vld [vmem:[#allocation5 + $0x18] sm:$0xff]  ;;  %s500_s24 = sshll.u32 %s793_s15, 7  ;;  %s246_s9 = scalar_lea.vmem [#allocation7], %s495_s25 }
  0x5c   : > { %v556_v5 = vpack.c.bf16 %v259_v3, %v258_v2  ;;  %v559_v7 = vpack.c.bf16 %v261_v6, %v260_v4  ;;  %v262_v8 = vld [vmem:[#allocation5 + $0x20] sm:$0xff]  ;;  %v263_v9 = vld [vmem:[#allocation5 + $0x28] sm:$0xff]  ;;  %v264_v11 = vld [vmem:[#allocation5 + $0x30] sm:$0xff]  ;;  %s377_s10 = sshll.u32 %s246_s9, 4  ;;  %s1006_s29 = scalar_lea.hbm %s1058_s3, %s500_s24  ;;  %s1008_s10 = int_to_ptr.vmem [resolvable:$true] %s377_s10 }
  0x5d   : > { %v562_v10 = vpack.c.bf16 %v263_v9, %v262_v8  ;;  %v265_v12 = vld [vmem:[#allocation5 + $0x38] sm:$0xff]  ;;  %v266_v14 = vld [vmem:[#allocation5 + $0x40] sm:$0xff]  ;;  %v267_v15 = vld [vmem:[#allocation5 + $0x48] sm:$0xff]  ;;  %s363_s6 = scalar_lea.sflag [#allocation4], %s980_s19  ;;  %s715_s26 = scalar_lea.vmem %s1008_s10, 128 }
  0x5e   : > { %557 = vmatpush3.bf16.msra.mxu0 %v556_v5  ;;  %v565_v13 = vpack.c.bf16 %v265_v12, %v264_v11  ;;  %v568_v16 = vpack.c.bf16 %v267_v15, %v266_v14  ;;  %v268_v17 = vld [vmem:[#allocation5 + $0x50] sm:$0xff]  ;;  %v269_v18 = vld [vmem:[#allocation5 + $0x58] sm:$0xff]  ;;  %v270_v20 = vld [vmem:[#allocation5 + $0x60] sm:$0xff]  ;;  %p716_p4 = scmp.ne.s32.totalorder %s1008_s10, %s715_s26  ;;  %s810_s15 = smov [#allocation7]  }
  0x5f   : > { %558 = vmatprep.subr.bf16.mxu0 %v807_v0  ;;  %v571_v19 = vpack.c.bf16 %v269_v18, %v268_v17  ;;  %v271_v21 = vld [vmem:[#allocation5 + $0x68] sm:$0xff]  ;;  %v272_v23 = vld [vmem:[#allocation5 + $0x70] sm:$0xff]  ;;  %v273_v24 = vld [vmem:[#allocation5 + $0x78] sm:$0xff]  ;;  %s719_s7 = sshll.u32 %s810_s15, 4  ;;  %s720_s7 = int_to_ptr.vmem [resolvable:$false] %s719_s7 }
  0x60   : > { %v574_v22 = vpack.c.bf16 %v271_v21, %v270_v20  ;;  %v577_v25 = vpack.c.bf16 %v273_v24, %v272_v23  ;;  %v257_v26 = vld [vmem:[%s986_s4] sm:$0xff]  ;;  %p717_p6 = pnand %p716_p4, %p927_p10  ;;  %s721_s8 = scalar_lea.vmem %s720_s7, 256 }
  0x61   : > { %v498_v28 = vld [vmem:[%s1057_s2] ss:$0 sm:$0xff]  ;;  %p722_p12 = scmp.lt.s32.totalorder %s1008_s10, %s720_s7  ;;  %p723_p11 = scmp.lt.s32.totalorder %s721_s8, %s715_s26 }
  0x62   : > { %560 = vmatpush3.bf16.msra.mxu0 %v559_v7  ;;  %p718_p8 = pneg %p717_p6 }
  0x63   : > { %561 = vmatprep.subr.bf16.mxu0 %v807_v0  ;;  %p724_p0 = por %p723_p11, %p722_p12 }
  0x65   : > { %p725_p5 = pnand %p724_p0, %p718_p8 }
  0x66   : > { %563 = vmatpush3.bf16.msra.mxu0 %v562_v10 }
  0x67   : > { %564 = vmatprep.subr.bf16.mxu0 %v807_v0 }
  0x6a   : > { %566 = vmatpush3.bf16.msra.mxu0 %v565_v13 }
  0x6b   : > { %567 = vmatprep.subr.bf16.mxu0 %v807_v0 }
  0x6e   : > { %569 = vmatpush3.bf16.msra.mxu0 %v568_v16 }
  0x6f   : > { %570 = vmatprep.subr.bf16.mxu0 %v807_v0 }
  0x72   : > { %572 = vmatpush3.bf16.msra.mxu0 %v571_v19 }
  0x73   : > { %573 = vmatprep.subr.bf16.mxu0 %v807_v0 }
  0x76   : > { %575 = vmatpush3.bf16.msra.mxu0 %v574_v22 }
  0x77   : > { %576 = vmatprep.subr.bf16.mxu0 %v807_v0 }
  0x7a   : > { %578 = vmatpush3.bf16.msra.mxu0 %v577_v25 }
  0x7d   : > { %553 = vmatmul.mubr.f32.vlgmr.msra.gmra.mrb[0].mxu0 %v257_v26 }
 0x150   : > { %v340_v27 = vpop.f32.mrb[0].mxu0 }
 0x151   : > { %v554_v29 = vpop.f32.mrb[1].mxu0  ;;  %v357_v30 = vadd.f32 %v498_v28, %v340_v27 }
 0x153   : > { %vm358_vm1 = vcmp.gt.f32.partialorder %v357_v30, 0.0  ;;  %v359_v31 = vmul.f32 0.01, %v357_v30 }
 0x155   : > { %v360_v32 = vsel %vm358_vm1, %v357_v30, %v359_v31 }
 0x156   : > { %361 = vst [vmem:[%s246_s9] sm:$0xff] %v360_v32 }
 0x157   : > { %728 = shalt.err (!%p725_p5)
}
 0x158   : > { %s729_s21 = scalar_lea.hbm %s1006_s29, 128  ;;  %s733_s27 = scalar_lea.hbm %s1058_s3, 256 }
 0x159   : > { %p730_p9 = scmp.ne.s32.totalorder %s1006_s29, %s729_s21  ;;  %p734_p7 = scmp.lt.u32.totalorder %s1006_s29, %s1058_s3 }
 0x15a   : > { %p735_p3 = scmp.lt.u32.totalorder %s733_s27, %s729_s21  ;;  %p737_p4 = scmp.lt.u32.totalorder %s729_s21, %s1006_s29 }
 0x15b   : > { %p731_p1 = pnand %p730_p9, %p927_p10 }
 0x15c   : > { %p736_p13 = por %p735_p3, %p734_p7 }
 0x15d   : > { %p732_p2 = pneg %p731_p1 }
 0x15e   : > { %p738_p6 = por %p737_p4, %p736_p13 }
 0x160   : > { %p739_p8 = pnand %p738_p6, %p732_p2 }
 0x162   : > { %742 = shalt.err (!%p739_p8)
}
 0x163   : > { %585 = dma.vmem_to_hbm [thread:$0]  (%p927_p10), %s1008_s10, 128, %s1006_s29, %s363_s6  }
 0x164 PF: > { %s389_s22 = sand.u32 1, %s781_s12   ;;  %p1076_p12 = scmp.ne.s32.totalorder %s1066_s23, 0 }
 0x165   : > { %p1077_p11 = scmp.ge.s32.totalorder %s801_s17, 2  ;;  %s390_s24 = scalar_lea.sflag [#allocation4], %s389_s22 }
 0x167   : > { %p596_p0 = pnand %p1077_p11, %p1076_p12 }
 0x169   : > { %776 = dma.done.wait (!%p596_p0), %s390_s24, 128  }
 0x16a   : > { %778 = vsyncadd (!%p596_p0), %s390_s24, 4294967168  ;;  %s20_s17 = sadd.s32 1, %s801_s17   ;;  %s1078_s12 = smov %s785_s13 }
 0x16b   : > { %p17_p5 = scmp.ge.s32.totalorder %s20_s17, 4   ;;  %s1079_s13 = smov %s789_s14 }
 0x16c   : > { %s1080_s14 = smov %s936_s5  ;;  %s1081_s15 = smov %s797_s16 }
 0x16d   : > { %s1082_s16 = smov %s1084_s28  ;;  %19 = sbr.rel (!%p17_p5) target bundleno = 7 (0x7), region = 93 }
 0x174   :  { %395 = vsyncpa [#allocation3], 1 }
 0x175   :  { %397 = vsyncpa [#allocation3 + $0x1], 1 }
 0x176   :  { %398 = vsyncpa [#allocation6], 1 }
 0x177   :  { %399 = vsyncpa [#allocation4], 1 }
 0x178   :  { %401 = vsyncpa [#allocation4 + $0x1], 1 }

</bundles_post_ra>
